<compile_context>
chip_gen: v5e
topology: v5e:2x2
jax: 0.10.0
libtpu: 0.0.40
codegen_flags: <defaults>
</compile_context>

<pallas_src>
import math
from functools import partial

import jax
import jax.numpy as jnp
from jax import lax
from jax.experimental import pallas as pl
from jax.experimental.pallas import tpu as pltpu

MAX_SEQ = 16  # stands in for config.BLOCK_SIZE


def build_sin_cos(seq_len, half_dim, base=10000.0):
    """JAX port of the torch build_sin_cos: (sin, cos) of shape [seq_len, half_dim]."""
    pos = jnp.arange(seq_len, dtype=jnp.float32)[:, None]
    inv_freq = 1.0 / (base ** (jnp.arange(0, half_dim * 2, 2, dtype=jnp.float32)
                               / (half_dim * 2)))
    angles = pos * inv_freq[None, :]
    return jnp.sin(angles), jnp.cos(angles)


# ------------------- one-time parameter preparation ------------------------
def prepare_params(w_qkv, w_proj, rope_sin, rope_cos, n_head,
                   weight_dtype=jnp.bfloat16):
    """One-time prep (outside the per-call forward):
      - split the fused [3C, C] qkv weight into x@W form with heads packed in
        the output dim,
      - fold the rotate-half swap permutation into extra weight columns,
      - fuse everything into ONE wide bf16 weight  W_big = [C, 5C],
      - pre-transpose the proj weight (bf16),
      - build sign-folded, head-tiled f32 sin/cos tables of shape [MAX_SEQ, C]."""
    _, C = w_qkv.shape
    D = C // n_head
    half = D // 2

    w = w_qkv.reshape(n_head, 3, D, C)          # rows ordered (head, part, dim)
    wq_t = w[:, 0].reshape(C, C).T              # [C, C]; x @ wq_t -> q, heads packed
    wk_t = w[:, 1].reshape(C, C).T
    wv_t = w[:, 2].reshape(C, C).T

    # Rotate-half swap folded into the weights: column j of (W @ swap) is
    # column src[j] of W, so the kernel never runs a swap matmul or a roll.
    idx = jnp.arange(C)
    head, d = idx // D, idx % D
    src = head * D + (d + half) % D
    wq_sw_t = wq_t[:, src]
    wk_sw_t = wk_t[:, src]

    # One wide weight: q | k | v | q_swapped | k_swapped   -> single MXU stream
    w_big = jnp.concatenate([wq_t, wk_t, wv_t, wq_sw_t, wk_sw_t],
                            axis=1).astype(weight_dtype)            # [C, 5C]
    wproj_t = w_proj.T.astype(weight_dtype)                         # [C, C]

    sin = rope_sin[:, :half].astype(jnp.float32)                    # [MAX_SEQ, half]
    cos = rope_cos[:, :half].astype(jnp.float32)
    # sign folded into sin: x_rot = x*cos_t + x_swapped*sin_t   (f32 VPU math)
    sin_t = jnp.tile(jnp.concatenate([-sin, sin], axis=-1), (1, n_head))  # [MAX_SEQ, C]
    cos_t = jnp.tile(jnp.concatenate([cos, cos], axis=-1), (1, n_head))   # [MAX_SEQ, C]

    return dict(w_big=w_big, wproj_t=wproj_t, sin_t=sin_t, cos_t=cos_t)


# --------------------- fused MHA forward kernel ----------------------------
def _mha_fused_kernel(x_ref, wbig_ref, wproj_ref, sin_ref, cos_ref,
                      out_ref, ctx_ref, *, B, T, n_head, scale):
    """Single step: fused qkv(+swap) matmul + RoPE + causal attention + output
    projection for the whole (flattened) batch, entirely in VMEM."""
    BT, C = x_ref.shape
    H = n_head
    D = C // H
    f32 = jnp.float32
    bf16 = jnp.bfloat16

    x = x_ref[...]                                                   # bf16 [BT, C]

    # --- one wide projection: q | k | v | q_sw | k_sw, f32 accumulation -----
    qkv5 = jnp.dot(x, wbig_ref[...], preferred_element_type=f32)    # [BT, 5C] f32
    q_all = qkv5[:, 0 * C:1 * C]
    k_all = qkv5[:, 1 * C:2 * C]
    v_all = qkv5[:, 2 * C:3 * C]
    q_sw = qkv5[:, 3 * C:4 * C]
    k_sw = qkv5[:, 4 * C:5 * C]

    # --- RoPE on the VPU (sign-folded tables); scale applied to q in f32 ----
    sin_t = sin_ref[...]                                             # f32 [BT, C]
    cos_t = cos_ref[...]
    q_rot = (q_all * cos_t + q_sw * sin_t) * scale
    k_rot = k_all * cos_t + k_sw * sin_t

    # bf16 MXU operands for the attention dots (f32 accumulation below)
    q_b = q_rot.astype(bf16)
    k_b = k_rot.astype(bf16)
    v_b = v_all.astype(bf16)

    row = lax.broadcasted_iota(jnp.int32, (T, T), 0)
    col = lax.broadcasted_iota(jnp.int32, (T, T), 1)
    causal = col <= row

    # --- causal softmax attention: static (B, H) loop, per-head ctx written
    #     into a [BT, C] VMEM scratch (no lane-dim concatenate). -------------
    # TODO(synk): at real T/D this becomes flash-style online-softmax KV
    # tiling with tile-aligned D=128 head slices (see header note).
    for b in range(B):
        rs = slice(b * T, (b + 1) * T)
        for h in range(H):
            cs = slice(h * D, (h + 1) * D)
            s = lax.dot_general(q_b[rs, cs], k_b[rs, cs],
                                (((1,), (1,)), ((), ())),
                                preferred_element_type=f32)          # [T, T]
            s = jnp.where(causal, s, -jnp.inf)
            m = jnp.max(s, axis=-1, keepdims=True)
            p = jnp.exp(s - m)
            denom = jnp.sum(p, axis=-1, keepdims=True)
            p = (p * pl.reciprocal(denom, approx=True)).astype(bf16)  # EUP slot
            ctx_ref[rs, cs] = jnp.dot(p, v_b[rs, cs],
                                      preferred_element_type=f32)

    # --- output projection (bf16 operands, f32 accumulation) ---------------
    y = jnp.dot(ctx_ref[...].astype(bf16), wproj_ref[...],
                preferred_element_type=f32)                          # [BT, C]

    # --- packed lane-dense output slab: [ y | k_rot | v ] -------------------
    out_ref[:, 0 * C:1 * C] = y.astype(out_ref.dtype)
    out_ref[:, 1 * C:2 * C] = k_rot.astype(out_ref.dtype)
    out_ref[:, 2 * C:3 * C] = v_all.astype(out_ref.dtype)


def multi_head_attention(x, params, n_head):
    """Mirrors MultiHeadAttention.forward (no past_k/past_v, no dist).
    Returns (y [B,T,C], current_k [B,T,H,D] RoPE-applied, current_v [B,T,H,D])."""
    B, T, C = x.shape
    D = C // n_head
    BT = B * T
    scale = 1.0 / math.sqrt(D)   # flash-attn default softmax_scale (None)

    # flatten batch into rows, cast MXU operand to bf16 once
    x_flat = x.reshape(BT, C).astype(jnp.bfloat16)
    # RoPE tables tiled per batch row block (cheap; tiny at these shapes)
    sin_bt = jnp.tile(params['sin_t'][:T], (B, 1))                   # [BT, C] f32
    cos_bt = jnp.tile(params['cos_t'][:T], (B, 1))

    kernel = partial(_mha_fused_kernel, B=B, T=T, n_head=n_head, scale=scale)
    spec2 = lambda r, c: pl.BlockSpec((r, c), lambda i: (0, 0))

    out = pl.pallas_call(
        kernel,
        out_shape=jax.ShapeDtypeStruct((BT, 3 * C), x.dtype),
        grid=(1,),                      # single step: whole problem fits VMEM
        in_specs=[spec2(BT, C),         # x (bf16)
                  spec2(C, 5 * C),      # W_big (bf16)
                  spec2(C, C),          # W_proj^T (bf16)
                  spec2(BT, C),         # sin table (f32)
                  spec2(BT, C)],        # cos table (f32)
        out_specs=spec2(BT, 3 * C),
        scratch_shapes=[pltpu.VMEM((BT, C), jnp.float32)],   # ctx accumulator
        compiler_params=pltpu.CompilerParams(
            dimension_semantics=("arbitrary",)),
    )(x_flat, params['w_big'], params['wproj_t'], sin_bt, cos_bt)

    # free metadata reshapes / cheap slices back to the module's return layout
    out = out.reshape(B, T, 3 * C)
    y = out[..., :C]
    current_k = out[..., C:2 * C].reshape(B, T, n_head, D)
    current_v = out[..., 2 * C:].reshape(B, T, n_head, D)
    return y, current_k, current_v


# --------------------------- pure-JAX reference -----------------------------
def reference(x, w_qkv, w_proj, rope_sin, rope_cos, n_head):
    B, T, C = x.shape
    H = n_head
    D = C // H
    half = D // 2
    qkv = (x @ w_qkv.T).reshape(B, T, H, 3 * D)
    q, k, v = qkv[..., :D], qkv[..., D:2 * D], qkv[..., 2 * D:]
    sin = rope_sin[:T, :half][None, :, None, :]
    cos = rope_cos[:T, :half][None, :, None, :]

    def rot(t):
        t1, t2 = t[..., :half], t[..., half:]
        return jnp.concatenate([t1 * cos - t2 * sin, t1 * sin + t2 * cos], axis=-1)

    qr, kr = rot(q), rot(k)
    scale = 1.0 / math.sqrt(D)
    s = jnp.einsum('bqhd,bkhd->bhqk', qr, kr) * scale
    mask = jnp.tril(jnp.ones((T, T), dtype=bool))
    s = jnp.where(mask[None, None], s, -jnp.inf)
    p = jax.nn.softmax(s, axis=-1)
    o = jnp.einsum('bhqk,bkhd->bqhd', p, v).reshape(B, T, C)
    y = o @ w_proj.T
    return y, kr, v


if __name__ == "__main__":
    key = jax.random.PRNGKey(0)
    B, T, C, H = 2, 8, 32, 4          # batch, seq, n_embed, n_head
    D = C // H                        # head_dim = 8

    kx, kq, kp = jax.random.split(key, 3)
    x = jax.random.normal(kx, (B, T, C), jnp.float32)
    # nn.Linear(n_embed, 3*n_embed, bias=False) weight: [3C, C]
    w_qkv = jax.random.normal(kq, (3 * C, C), jnp.float32) * (1.0 / math.sqrt(C))
    # nn.Linear(n_embed, n_embed, bias=False) weight: [C, C]
    w_proj = jax.random.normal(kp, (C, C), jnp.float32) * (1.0 / math.sqrt(C))

    rope_sin, rope_cos = build_sin_cos(MAX_SEQ, D // 2)

    # one-time param prep (bf16 fused weights, swap folded in, rope tables)
    params = prepare_params(w_qkv, w_proj, rope_sin, rope_cos, H)

    y, cur_k, cur_v = multi_head_attention(x, params, H)
    y = jax.block_until_ready(y)
    cur_k = jax.block_until_ready(cur_k)
    cur_v = jax.block_until_ready(cur_v)

    y_ref, k_ref, v_ref = reference(x, w_qkv, w_proj, rope_sin, rope_cos, H)
    # bf16 MXU operands (per perf review) + approx reciprocal -> slightly looser
    # tolerance on y than the pure-f32 reference; still far below any real bug.
    assert jnp.allclose(y, y_ref, atol=3e-2, rtol=3e-2), "output mismatch"
    assert jnp.allclose(cur_k, k_ref, atol=2e-2, rtol=2e-2), "k mismatch"
    assert jnp.allclose(cur_v, v_ref, atol=2e-2, rtol=2e-2), "v mismatch"

    print("KERNEL_OK")
</pallas_src>

<mosaic_0001>
module attributes {stable_mosaic.version = 11 : i64} {
  func.func @_mha_fused_kernel(%arg0: i32, %arg1: memref<16x32xbf16, #tpu.memory_space<vmem>>, %arg2: memref<32x160xbf16, #tpu.memory_space<vmem>>, %arg3: memref<32x32xbf16, #tpu.memory_space<vmem>>, %arg4: memref<16x32xf32, #tpu.memory_space<vmem>>, %arg5: memref<16x32xf32, #tpu.memory_space<vmem>>, %arg6: memref<16x96xf32, #tpu.memory_space<vmem>>, %arg7: memref<16x32xf32, #tpu.memory_space<vmem>>) attributes {dimension_semantics = [#tpu.dimension_semantics<arbitrary>], iteration_bounds = array<i64: 1>, scalar_prefetch = 0 : i64, scratch_operands = 1 : i64, tpu.core_type = #tpu.core_type<tc>, window_params = [{pipeline_mode = #tpu.pipeline_mode<synchronous>, transform_indices = @transform_0, window_bounds = array<i64: 16, 32>}, {pipeline_mode = #tpu.pipeline_mode<synchronous>, transform_indices = @transform_1, window_bounds = array<i64: 32, 160>}, {pipeline_mode = #tpu.pipeline_mode<synchronous>, transform_indices = @transform_2, window_bounds = array<i64: 32, 32>}, {pipeline_mode = #tpu.pipeline_mode<synchronous>, transform_indices = @transform_3, window_bounds = array<i64: 16, 32>}, {pipeline_mode = #tpu.pipeline_mode<synchronous>, transform_indices = @transform_4, window_bounds = array<i64: 16, 32>}, {pipeline_mode = #tpu.pipeline_mode<synchronous>, transform_indices = @transform_5, window_bounds = array<i64: 16, 96>}]} {
    %c0 = arith.constant 0 : index
    %c0_0 = arith.constant 0 : index
    %0 = vector.load %arg1[%c0, %c0_0] : memref<16x32xbf16, #tpu.memory_space<vmem>>, vector<16x32xbf16>
    %c0_1 = arith.constant 0 : index
    %c0_2 = arith.constant 0 : index
    %1 = vector.load %arg2[%c0_1, %c0_2] : memref<32x160xbf16, #tpu.memory_space<vmem>>, vector<32x160xbf16>
    %cst = arith.constant dense<0.000000e+00> : vector<16x160xf32>
    %2 = tpu.matmul %0, %1, %cst {dimension_numbers = #tpu.dot_dimension_numbers<[1], [0], [0], [1], [0, 0, 1, 1], [], []>} : vector<16x32xbf16>, vector<32x160xbf16>, vector<16x160xf32> -> vector<16x160xf32>
    %3 = vector.extract_strided_slice %2 {offsets = [0, 0], sizes = [16, 32], strides = [1, 1]} : vector<16x160xf32> to vector<16x32xf32>
    %4 = vector.extract_strided_slice %2 {offsets = [0, 32], sizes = [16, 32], strides = [1, 1]} : vector<16x160xf32> to vector<16x32xf32>
    %5 = vector.extract_strided_slice %2 {offsets = [0, 64], sizes = [16, 32], strides = [1, 1]} : vector<16x160xf32> to vector<16x32xf32>
    %6 = vector.extract_strided_slice %2 {offsets = [0, 96], sizes = [16, 32], strides = [1, 1]} : vector<16x160xf32> to vector<16x32xf32>
    %7 = vector.extract_strided_slice %2 {offsets = [0, 128], sizes = [16, 32], strides = [1, 1]} : vector<16x160xf32> to vector<16x32xf32>
    %c0_3 = arith.constant 0 : index
    %c0_4 = arith.constant 0 : index
    %8 = vector.load %arg4[%c0_3, %c0_4] : memref<16x32xf32, #tpu.memory_space<vmem>>, vector<16x32xf32>
    %c0_5 = arith.constant 0 : index
    %c0_6 = arith.constant 0 : index
    %9 = vector.load %arg5[%c0_5, %c0_6] : memref<16x32xf32, #tpu.memory_space<vmem>>, vector<16x32xf32>
    %10 = arith.mulf %3, %9 : vector<16x32xf32>
    %11 = arith.mulf %6, %8 : vector<16x32xf32>
    %12 = arith.addf %10, %11 : vector<16x32xf32>
    %cst_7 = arith.constant 0.353553385 : f32
    %13 = vector.broadcast %cst_7 : f32 to vector<16x32xf32>
    %14 = arith.mulf %12, %13 : vector<16x32xf32>
    %15 = arith.mulf %4, %9 : vector<16x32xf32>
    %16 = arith.mulf %7, %8 : vector<16x32xf32>
    %17 = arith.addf %15, %16 : vector<16x32xf32>
    %18 = arith.truncf %14 : vector<16x32xf32> to vector<16x32xbf16>
    %19 = arith.truncf %17 : vector<16x32xf32> to vector<16x32xbf16>
    %20 = arith.truncf %5 : vector<16x32xf32> to vector<16x32xbf16>
    %21 = tpu.iota {dimensions = array<i32: 0>} : vector<8x8xi32>
    %22 = tpu.iota {dimensions = array<i32: 1>} : vector<8x8xi32>
    %23 = arith.cmpi sle, %22, %21 : vector<8x8xi32>
    %24 = vector.extract_strided_slice %18 {offsets = [0, 0], sizes = [8, 8], strides = [1, 1]} : vector<16x32xbf16> to vector<8x8xbf16>
    %25 = vector.extract_strided_slice %19 {offsets = [0, 0], sizes = [8, 8], strides = [1, 1]} : vector<16x32xbf16> to vector<8x8xbf16>
    %cst_8 = arith.constant dense<0.000000e+00> : vector<8x8xf32>
    %26 = tpu.matmul %24, %25, %cst_8 {dimension_numbers = #tpu.dot_dimension_numbers<[1], [1], [0], [0], [0, 0, 1, 0], [], []>} : vector<8x8xbf16>, vector<8x8xbf16>, vector<8x8xf32> -> vector<8x8xf32>
    %cst_9 = arith.constant 0xFF800000 : f32
    %27 = vector.broadcast %cst_9 : f32 to vector<8x8xf32>
    %28 = arith.select %23, %26, %27 : vector<8x8xi1>, vector<8x8xf32>
    %cst_10 = arith.constant dense<0xFF800000> : vector<8xf32>
    %29 = vector.multi_reduction <maximumf>, %28, %cst_10 [1] : vector<8x8xf32> to vector<8xf32>
    %30 = vector.shape_cast %29 : vector<8xf32> to vector<8x1xf32>
    %31 = vector.broadcast %30 : vector<8x1xf32> to vector<8x8xf32>
    %32 = arith.subf %28, %31 : vector<8x8xf32>
    %33 = math.exp %32 : vector<8x8xf32>
    %cst_11 = arith.constant dense<0.000000e+00> : vector<8xf32>
    %34 = vector.multi_reduction <add>, %33, %cst_11 [1] : vector<8x8xf32> to vector<8xf32>
    %35 = vector.shape_cast %34 : vector<8xf32> to vector<8x1xf32>
    %36 = tpu.reciprocal %35 {approx = true} : vector<8x1xf32> -> vector<8x1xf32>
    %37 = vector.broadcast %36 : vector<8x1xf32> to vector<8x8xf32>
    %38 = arith.mulf %33, %37 : vector<8x8xf32>
    %39 = arith.truncf %38 : vector<8x8xf32> to vector<8x8xbf16>
    %40 = vector.extract_strided_slice %20 {offsets = [0, 0], sizes = [8, 8], strides = [1, 1]} : vector<16x32xbf16> to vector<8x8xbf16>
    %cst_12 = arith.constant dense<0.000000e+00> : vector<8x8xf32>
    %41 = tpu.matmul %39, %40, %cst_12 {dimension_numbers = #tpu.dot_dimension_numbers<[1], [0], [0], [1], [0, 0, 1, 1], [], []>} : vector<8x8xbf16>, vector<8x8xbf16>, vector<8x8xf32> -> vector<8x8xf32>
    %c0_13 = arith.constant 0 : index
    %c0_14 = arith.constant 0 : index
    %42 = vector.load %arg7[%c0_13, %c0_14] : memref<16x32xf32, #tpu.memory_space<vmem>>, vector<8x8xf32>
    tpu.vector_store %arg7[%c0_13, %c0_14], %41 {strides = array<i32>} : memref<16x32xf32, #tpu.memory_space<vmem>>, vector<8x8xf32>,
    %43 = vector.extract_strided_slice %18 {offsets = [0, 8], sizes = [8, 8], strides = [1, 1]} : vector<16x32xbf16> to vector<8x8xbf16>
    %44 = vector.extract_strided_slice %19 {offsets = [0, 8], sizes = [8, 8], strides = [1, 1]} : vector<16x32xbf16> to vector<8x8xbf16>
    %cst_15 = arith.constant dense<0.000000e+00> : vector<8x8xf32>
    %45 = tpu.matmul %43, %44, %cst_15 {dimension_numbers = #tpu.dot_dimension_numbers<[1], [1], [0], [0], [0, 0, 1, 0], [], []>} : vector<8x8xbf16>, vector<8x8xbf16>, vector<8x8xf32> -> vector<8x8xf32>
    %cst_16 = arith.constant 0xFF800000 : f32
    %46 = vector.broadcast %cst_16 : f32 to vector<8x8xf32>
    %47 = arith.select %23, %45, %46 : vector<8x8xi1>, vector<8x8xf32>
    %cst_17 = arith.constant dense<0xFF800000> : vector<8xf32>
    %48 = vector.multi_reduction <maximumf>, %47, %cst_17 [1] : vector<8x8xf32> to vector<8xf32>
    %49 = vector.shape_cast %48 : vector<8xf32> to vector<8x1xf32>
    %50 = vector.broadcast %49 : vector<8x1xf32> to vector<8x8xf32>
    %51 = arith.subf %47, %50 : vector<8x8xf32>
    %52 = math.exp %51 : vector<8x8xf32>
    %cst_18 = arith.constant dense<0.000000e+00> : vector<8xf32>
    %53 = vector.multi_reduction <add>, %52, %cst_18 [1] : vector<8x8xf32> to vector<8xf32>
    %54 = vector.shape_cast %53 : vector<8xf32> to vector<8x1xf32>
    %55 = tpu.reciprocal %54 {approx = true} : vector<8x1xf32> -> vector<8x1xf32>
    %56 = vector.broadcast %55 : vector<8x1xf32> to vector<8x8xf32>
    %57 = arith.mulf %52, %56 : vector<8x8xf32>
    %58 = arith.truncf %57 : vector<8x8xf32> to vector<8x8xbf16>
    %59 = vector.extract_strided_slice %20 {offsets = [0, 8], sizes = [8, 8], strides = [1, 1]} : vector<16x32xbf16> to vector<8x8xbf16>
    %cst_19 = arith.constant dense<0.000000e+00> : vector<8x8xf32>
    %60 = tpu.matmul %58, %59, %cst_19 {dimension_numbers = #tpu.dot_dimension_numbers<[1], [0], [0], [1], [0, 0, 1, 1], [], []>} : vector<8x8xbf16>, vector<8x8xbf16>, vector<8x8xf32> -> vector<8x8xf32>
    %c0_20 = arith.constant 0 : index
    %c8 = arith.constant 8 : index
    %61 = vector.load %arg7[%c0_20, %c8] : memref<16x32xf32, #tpu.memory_space<vmem>>, vector<8x8xf32>
    tpu.vector_store %arg7[%c0_20, %c8], %60 {strides = array<i32>} : memref<16x32xf32, #tpu.memory_space<vmem>>, vector<8x8xf32>,
    %62 = vector.extract_strided_slice %18 {offsets = [0, 16], sizes = [8, 8], strides = [1, 1]} : vector<16x32xbf16> to vector<8x8xbf16>
    %63 = vector.extract_strided_slice %19 {offsets = [0, 16], sizes = [8, 8], strides = [1, 1]} : vector<16x32xbf16> to vector<8x8xbf16>
    %cst_21 = arith.constant dense<0.000000e+00> : vector<8x8xf32>
    %64 = tpu.matmul %62, %63, %cst_21 {dimension_numbers = #tpu.dot_dimension_numbers<[1], [1], [0], [0], [0, 0, 1, 0], [], []>} : vector<8x8xbf16>, vector<8x8xbf16>, vector<8x8xf32> -> vector<8x8xf32>
    %cst_22 = arith.constant 0xFF800000 : f32
    %65 = vector.broadcast %cst_22 : f32 to vector<8x8xf32>
    %66 = arith.select %23, %64, %65 : vector<8x8xi1>, vector<8x8xf32>
    %cst_23 = arith.constant dense<0xFF800000> : vector<8xf32>
    %67 = vector.multi_reduction <maximumf>, %66, %cst_23 [1] : vector<8x8xf32> to vector<8xf32>
    %68 = vector.shape_cast %67 : vector<8xf32> to vector<8x1xf32>
    %69 = vector.broadcast %68 : vector<8x1xf32> to vector<8x8xf32>
    %70 = arith.subf %66, %69 : vector<8x8xf32>
    %71 = math.exp %70 : vector<8x8xf32>
    %cst_24 = arith.constant dense<0.000000e+00> : vector<8xf32>
    %72 = vector.multi_reduction <add>, %71, %cst_24 [1] : vector<8x8xf32> to vector<8xf32>
    %73 = vector.shape_cast %72 : vector<8xf32> to vector<8x1xf32>
    %74 = tpu.reciprocal %73 {approx = true} : vector<8x1xf32> -> vector<8x1xf32>
    %75 = vector.broadcast %74 : vector<8x1xf32> to vector<8x8xf32>
    %76 = arith.mulf %71, %75 : vector<8x8xf32>
    %77 = arith.truncf %76 : vector<8x8xf32> to vector<8x8xbf16>
    %78 = vector.extract_strided_slice %20 {offsets = [0, 16], sizes = [8, 8], strides = [1, 1]} : vector<16x32xbf16> to vector<8x8xbf16>
    %cst_25 = arith.constant dense<0.000000e+00> : vector<8x8xf32>
    %79 = tpu.matmul %77, %78, %cst_25 {dimension_numbers = #tpu.dot_dimension_numbers<[1], [0], [0], [1], [0, 0, 1, 1], [], []>} : vector<8x8xbf16>, vector<8x8xbf16>, vector<8x8xf32> -> vector<8x8xf32>
    %c0_26 = arith.constant 0 : index
    %c16 = arith.constant 16 : index
    %80 = vector.load %arg7[%c0_26, %c16] : memref<16x32xf32, #tpu.memory_space<vmem>>, vector<8x8xf32>
    tpu.vector_store %arg7[%c0_26, %c16], %79 {strides = array<i32>} : memref<16x32xf32, #tpu.memory_space<vmem>>, vector<8x8xf32>,
    %81 = vector.extract_strided_slice %18 {offsets = [0, 24], sizes = [8, 8], strides = [1, 1]} : vector<16x32xbf16> to vector<8x8xbf16>
    %82 = vector.extract_strided_slice %19 {offsets = [0, 24], sizes = [8, 8], strides = [1, 1]} : vector<16x32xbf16> to vector<8x8xbf16>
    %cst_27 = arith.constant dense<0.000000e+00> : vector<8x8xf32>
    %83 = tpu.matmul %81, %82, %cst_27 {dimension_numbers = #tpu.dot_dimension_numbers<[1], [1], [0], [0], [0, 0, 1, 0], [], []>} : vector<8x8xbf16>, vector<8x8xbf16>, vector<8x8xf32> -> vector<8x8xf32>
    %cst_28 = arith.constant 0xFF800000 : f32
    %84 = vector.broadcast %cst_28 : f32 to vector<8x8xf32>
    %85 = arith.select %23, %83, %84 : vector<8x8xi1>, vector<8x8xf32>
    %cst_29 = arith.constant dense<0xFF800000> : vector<8xf32>
    %86 = vector.multi_reduction <maximumf>, %85, %cst_29 [1] : vector<8x8xf32> to vector<8xf32>
    %87 = vector.shape_cast %86 : vector<8xf32> to vector<8x1xf32>
    %88 = vector.broadcast %87 : vector<8x1xf32> to vector<8x8xf32>
    %89 = arith.subf %85, %88 : vector<8x8xf32>
    %90 = math.exp %89 : vector<8x8xf32>
    %cst_30 = arith.constant dense<0.000000e+00> : vector<8xf32>
    %91 = vector.multi_reduction <add>, %90, %cst_30 [1] : vector<8x8xf32> to vector<8xf32>
    %92 = vector.shape_cast %91 : vector<8xf32> to vector<8x1xf32>
    %93 = tpu.reciprocal %92 {approx = true} : vector<8x1xf32> -> vector<8x1xf32>
    %94 = vector.broadcast %93 : vector<8x1xf32> to vector<8x8xf32>
    %95 = arith.mulf %90, %94 : vector<8x8xf32>
    %96 = arith.truncf %95 : vector<8x8xf32> to vector<8x8xbf16>
    %97 = vector.extract_strided_slice %20 {offsets = [0, 24], sizes = [8, 8], strides = [1, 1]} : vector<16x32xbf16> to vector<8x8xbf16>
    %cst_31 = arith.constant dense<0.000000e+00> : vector<8x8xf32>
    %98 = tpu.matmul %96, %97, %cst_31 {dimension_numbers = #tpu.dot_dimension_numbers<[1], [0], [0], [1], [0, 0, 1, 1], [], []>} : vector<8x8xbf16>, vector<8x8xbf16>, vector<8x8xf32> -> vector<8x8xf32>
    %c0_32 = arith.constant 0 : index
    %c24 = arith.constant 24 : index
    %99 = vector.load %arg7[%c0_32, %c24] : memref<16x32xf32, #tpu.memory_space<vmem>>, vector<8x8xf32>
    tpu.vector_store %arg7[%c0_32, %c24], %98 {strides = array<i32>} : memref<16x32xf32, #tpu.memory_space<vmem>>, vector<8x8xf32>,
    %100 = vector.extract_strided_slice %18 {offsets = [8, 0], sizes = [8, 8], strides = [1, 1]} : vector<16x32xbf16> to vector<8x8xbf16>
    %101 = vector.extract_strided_slice %19 {offsets = [8, 0], sizes = [8, 8], strides = [1, 1]} : vector<16x32xbf16> to vector<8x8xbf16>
    %cst_33 = arith.constant dense<0.000000e+00> : vector<8x8xf32>
    %102 = tpu.matmul %100, %101, %cst_33 {dimension_numbers = #tpu.dot_dimension_numbers<[1], [1], [0], [0], [0, 0, 1, 0], [], []>} : vector<8x8xbf16>, vector<8x8xbf16>, vector<8x8xf32> -> vector<8x8xf32>
    %cst_34 = arith.constant 0xFF800000 : f32
    %103 = vector.broadcast %cst_34 : f32 to vector<8x8xf32>
    %104 = arith.select %23, %102, %103 : vector<8x8xi1>, vector<8x8xf32>
    %cst_35 = arith.constant dense<0xFF800000> : vector<8xf32>
    %105 = vector.multi_reduction <maximumf>, %104, %cst_35 [1] : vector<8x8xf32> to vector<8xf32>
    %106 = vector.shape_cast %105 : vector<8xf32> to vector<8x1xf32>
    %107 = vector.broadcast %106 : vector<8x1xf32> to vector<8x8xf32>
    %108 = arith.subf %104, %107 : vector<8x8xf32>
    %109 = math.exp %108 : vector<8x8xf32>
    %cst_36 = arith.constant dense<0.000000e+00> : vector<8xf32>
    %110 = vector.multi_reduction <add>, %109, %cst_36 [1] : vector<8x8xf32> to vector<8xf32>
    %111 = vector.shape_cast %110 : vector<8xf32> to vector<8x1xf32>
    %112 = tpu.reciprocal %111 {approx = true} : vector<8x1xf32> -> vector<8x1xf32>
    %113 = vector.broadcast %112 : vector<8x1xf32> to vector<8x8xf32>
    %114 = arith.mulf %109, %113 : vector<8x8xf32>
    %115 = arith.truncf %114 : vector<8x8xf32> to vector<8x8xbf16>
    %116 = vector.extract_strided_slice %20 {offsets = [8, 0], sizes = [8, 8], strides = [1, 1]} : vector<16x32xbf16> to vector<8x8xbf16>
    %cst_37 = arith.constant dense<0.000000e+00> : vector<8x8xf32>
    %117 = tpu.matmul %115, %116, %cst_37 {dimension_numbers = #tpu.dot_dimension_numbers<[1], [0], [0], [1], [0, 0, 1, 1], [], []>} : vector<8x8xbf16>, vector<8x8xbf16>, vector<8x8xf32> -> vector<8x8xf32>
    %c8_38 = arith.constant 8 : index
    %c0_39 = arith.constant 0 : index
    %118 = vector.load %arg7[%c8_38, %c0_39] : memref<16x32xf32, #tpu.memory_space<vmem>>, vector<8x8xf32>
    tpu.vector_store %arg7[%c8_38, %c0_39], %117 {strides = array<i32>} : memref<16x32xf32, #tpu.memory_space<vmem>>, vector<8x8xf32>,
    %119 = vector.extract_strided_slice %18 {offsets = [8, 8], sizes = [8, 8], strides = [1, 1]} : vector<16x32xbf16> to vector<8x8xbf16>
    %120 = vector.extract_strided_slice %19 {offsets = [8, 8], sizes = [8, 8], strides = [1, 1]} : vector<16x32xbf16> to vector<8x8xbf16>
    %cst_40 = arith.constant dense<0.000000e+00> : vector<8x8xf32>
    %121 = tpu.matmul %119, %120, %cst_40 {dimension_numbers = #tpu.dot_dimension_numbers<[1], [1], [0], [0], [0, 0, 1, 0], [], []>} : vector<8x8xbf16>, vector<8x8xbf16>, vector<8x8xf32> -> vector<8x8xf32>
    %cst_41 = arith.constant 0xFF800000 : f32
    %122 = vector.broadcast %cst_41 : f32 to vector<8x8xf32>
    %123 = arith.select %23, %121, %122 : vector<8x8xi1>, vector<8x8xf32>
    %cst_42 = arith.constant dense<0xFF800000> : vector<8xf32>
    %124 = vector.multi_reduction <maximumf>, %123, %cst_42 [1] : vector<8x8xf32> to vector<8xf32>
    %125 = vector.shape_cast %124 : vector<8xf32> to vector<8x1xf32>
    %126 = vector.broadcast %125 : vector<8x1xf32> to vector<8x8xf32>
    %127 = arith.subf %123, %126 : vector<8x8xf32>
    %128 = math.exp %127 : vector<8x8xf32>
    %cst_43 = arith.constant dense<0.000000e+00> : vector<8xf32>
    %129 = vector.multi_reduction <add>, %128, %cst_43 [1] : vector<8x8xf32> to vector<8xf32>
    %130 = vector.shape_cast %129 : vector<8xf32> to vector<8x1xf32>
    %131 = tpu.reciprocal %130 {approx = true} : vector<8x1xf32> -> vector<8x1xf32>
    %132 = vector.broadcast %131 : vector<8x1xf32> to vector<8x8xf32>
    %133 = arith.mulf %128, %132 : vector<8x8xf32>
    %134 = arith.truncf %133 : vector<8x8xf32> to vector<8x8xbf16>
    %135 = vector.extract_strided_slice %20 {offsets = [8, 8], sizes = [8, 8], strides = [1, 1]} : vector<16x32xbf16> to vector<8x8xbf16>
    %cst_44 = arith.constant dense<0.000000e+00> : vector<8x8xf32>
    %136 = tpu.matmul %134, %135, %cst_44 {dimension_numbers = #tpu.dot_dimension_numbers<[1], [0], [0], [1], [0, 0, 1, 1], [], []>} : vector<8x8xbf16>, vector<8x8xbf16>, vector<8x8xf32> -> vector<8x8xf32>
    %c8_45 = arith.constant 8 : index
    %c8_46 = arith.constant 8 : index
    %137 = vector.load %arg7[%c8_45, %c8_46] : memref<16x32xf32, #tpu.memory_space<vmem>>, vector<8x8xf32>
    tpu.vector_store %arg7[%c8_45, %c8_46], %136 {strides = array<i32>} : memref<16x32xf32, #tpu.memory_space<vmem>>, vector<8x8xf32>,
    %138 = vector.extract_strided_slice %18 {offsets = [8, 16], sizes = [8, 8], strides = [1, 1]} : vector<16x32xbf16> to vector<8x8xbf16>
    %139 = vector.extract_strided_slice %19 {offsets = [8, 16], sizes = [8, 8], strides = [1, 1]} : vector<16x32xbf16> to vector<8x8xbf16>
    %cst_47 = arith.constant dense<0.000000e+00> : vector<8x8xf32>
    %140 = tpu.matmul %138, %139, %cst_47 {dimension_numbers = #tpu.dot_dimension_numbers<[1], [1], [0], [0], [0, 0, 1, 0], [], []>} : vector<8x8xbf16>, vector<8x8xbf16>, vector<8x8xf32> -> vector<8x8xf32>
    %cst_48 = arith.constant 0xFF800000 : f32
    %141 = vector.broadcast %cst_48 : f32 to vector<8x8xf32>
    %142 = arith.select %23, %140, %141 : vector<8x8xi1>, vector<8x8xf32>
    %cst_49 = arith.constant dense<0xFF800000> : vector<8xf32>
    %143 = vector.multi_reduction <maximumf>, %142, %cst_49 [1] : vector<8x8xf32> to vector<8xf32>
    %144 = vector.shape_cast %143 : vector<8xf32> to vector<8x1xf32>
    %145 = vector.broadcast %144 : vector<8x1xf32> to vector<8x8xf32>
    %146 = arith.subf %142, %145 : vector<8x8xf32>
    %147 = math.exp %146 : vector<8x8xf32>
    %cst_50 = arith.constant dense<0.000000e+00> : vector<8xf32>
    %148 = vector.multi_reduction <add>, %147, %cst_50 [1] : vector<8x8xf32> to vector<8xf32>
    %149 = vector.shape_cast %148 : vector<8xf32> to vector<8x1xf32>
    %150 = tpu.reciprocal %149 {approx = true} : vector<8x1xf32> -> vector<8x1xf32>
    %151 = vector.broadcast %150 : vector<8x1xf32> to vector<8x8xf32>
    %152 = arith.mulf %147, %151 : vector<8x8xf32>
    %153 = arith.truncf %152 : vector<8x8xf32> to vector<8x8xbf16>
    %154 = vector.extract_strided_slice %20 {offsets = [8, 16], sizes = [8, 8], strides = [1, 1]} : vector<16x32xbf16> to vector<8x8xbf16>
    %cst_51 = arith.constant dense<0.000000e+00> : vector<8x8xf32>
    %155 = tpu.matmul %153, %154, %cst_51 {dimension_numbers = #tpu.dot_dimension_numbers<[1], [0], [0], [1], [0, 0, 1, 1], [], []>} : vector<8x8xbf16>, vector<8x8xbf16>, vector<8x8xf32> -> vector<8x8xf32>
    %c8_52 = arith.constant 8 : index
    %c16_53 = arith.constant 16 : index
    %156 = vector.load %arg7[%c8_52, %c16_53] : memref<16x32xf32, #tpu.memory_space<vmem>>, vector<8x8xf32>
    tpu.vector_store %arg7[%c8_52, %c16_53], %155 {strides = array<i32>} : memref<16x32xf32, #tpu.memory_space<vmem>>, vector<8x8xf32>,
    %157 = vector.extract_strided_slice %18 {offsets = [8, 24], sizes = [8, 8], strides = [1, 1]} : vector<16x32xbf16> to vector<8x8xbf16>
    %158 = vector.extract_strided_slice %19 {offsets = [8, 24], sizes = [8, 8], strides = [1, 1]} : vector<16x32xbf16> to vector<8x8xbf16>
    %cst_54 = arith.constant dense<0.000000e+00> : vector<8x8xf32>
    %159 = tpu.matmul %157, %158, %cst_54 {dimension_numbers = #tpu.dot_dimension_numbers<[1], [1], [0], [0], [0, 0, 1, 0], [], []>} : vector<8x8xbf16>, vector<8x8xbf16>, vector<8x8xf32> -> vector<8x8xf32>
    %cst_55 = arith.constant 0xFF800000 : f32
    %160 = vector.broadcast %cst_55 : f32 to vector<8x8xf32>
    %161 = arith.select %23, %159, %160 : vector<8x8xi1>, vector<8x8xf32>
    %cst_56 = arith.constant dense<0xFF800000> : vector<8xf32>
    %162 = vector.multi_reduction <maximumf>, %161, %cst_56 [1] : vector<8x8xf32> to vector<8xf32>
    %163 = vector.shape_cast %162 : vector<8xf32> to vector<8x1xf32>
    %164 = vector.broadcast %163 : vector<8x1xf32> to vector<8x8xf32>
    %165 = arith.subf %161, %164 : vector<8x8xf32>
    %166 = math.exp %165 : vector<8x8xf32>
    %cst_57 = arith.constant dense<0.000000e+00> : vector<8xf32>
    %167 = vector.multi_reduction <add>, %166, %cst_57 [1] : vector<8x8xf32> to vector<8xf32>
    %168 = vector.shape_cast %167 : vector<8xf32> to vector<8x1xf32>
    %169 = tpu.reciprocal %168 {approx = true} : vector<8x1xf32> -> vector<8x1xf32>
    %170 = vector.broadcast %169 : vector<8x1xf32> to vector<8x8xf32>
    %171 = arith.mulf %166, %170 : vector<8x8xf32>
    %172 = arith.truncf %171 : vector<8x8xf32> to vector<8x8xbf16>
    %173 = vector.extract_strided_slice %20 {offsets = [8, 24], sizes = [8, 8], strides = [1, 1]} : vector<16x32xbf16> to vector<8x8xbf16>
    %cst_58 = arith.constant dense<0.000000e+00> : vector<8x8xf32>
    %174 = tpu.matmul %172, %173, %cst_58 {dimension_numbers = #tpu.dot_dimension_numbers<[1], [0], [0], [1], [0, 0, 1, 1], [], []>} : vector<8x8xbf16>, vector<8x8xbf16>, vector<8x8xf32> -> vector<8x8xf32>
    %c8_59 = arith.constant 8 : index
    %c24_60 = arith.constant 24 : index
    %175 = vector.load %arg7[%c8_59, %c24_60] : memref<16x32xf32, #tpu.memory_space<vmem>>, vector<8x8xf32>
    tpu.vector_store %arg7[%c8_59, %c24_60], %174 {strides = array<i32>} : memref<16x32xf32, #tpu.memory_space<vmem>>, vector<8x8xf32>,
    %c0_61 = arith.constant 0 : index
    %c0_62 = arith.constant 0 : index
    %176 = vector.load %arg7[%c0_61, %c0_62] : memref<16x32xf32, #tpu.memory_space<vmem>>, vector<16x32xf32>
    %177 = arith.truncf %176 : vector<16x32xf32> to vector<16x32xbf16>
    %c0_63 = arith.constant 0 : index
    %c0_64 = arith.constant 0 : index
    %178 = vector.load %arg3[%c0_63, %c0_64] : memref<32x32xbf16, #tpu.memory_space<vmem>>, vector<32x32xbf16>
    %cst_65 = arith.constant dense<0.000000e+00> : vector<16x32xf32>
    %179 = tpu.matmul %177, %178, %cst_65 {dimension_numbers = #tpu.dot_dimension_numbers<[1], [0], [0], [1], [0, 0, 1, 1], [], []>} : vector<16x32xbf16>, vector<32x32xbf16>, vector<16x32xf32> -> vector<16x32xf32>
    %c0_66 = arith.constant 0 : index
    %c0_67 = arith.constant 0 : index
    %180 = vector.load %arg6[%c0_66, %c0_67] : memref<16x96xf32, #tpu.memory_space<vmem>>, vector<16x32xf32>
    tpu.vector_store %arg6[%c0_66, %c0_67], %179 {strides = array<i32>} : memref<16x96xf32, #tpu.memory_space<vmem>>, vector<16x32xf32>,
    %c0_68 = arith.constant 0 : index
    %c32 = arith.constant 32 : index
    %181 = vector.load %arg6[%c0_68, %c32] : memref<16x96xf32, #tpu.memory_space<vmem>>, vector<16x32xf32>
    tpu.vector_store %arg6[%c0_68, %c32], %17 {strides = array<i32>} : memref<16x96xf32, #tpu.memory_space<vmem>>, vector<16x32xf32>,
    %c0_69 = arith.constant 0 : index
    %c64 = arith.constant 64 : index
    %182 = vector.load %arg6[%c0_69, %c64] : memref<16x96xf32, #tpu.memory_space<vmem>>, vector<16x32xf32>
    tpu.vector_store %arg6[%c0_69, %c64], %5 {strides = array<i32>} : memref<16x96xf32, #tpu.memory_space<vmem>>, vector<16x32xf32>,
    return
  }
  func.func @transform_0(%arg0: i32) -> (i32, i32) {
    %c0_i32 = arith.constant 0 : i32
    %c0_i32_0 = arith.constant 0 : i32
    %c0_i32_1 = arith.constant 0 : i32
    return %c0_i32, %c0_i32_0 : i32, i32
  }
  func.func @transform_1(%arg0: i32) -> (i32, i32) {
    %c0_i32 = arith.constant 0 : i32
    %c0_i32_0 = arith.constant 0 : i32
    %c0_i32_1 = arith.constant 0 : i32
    return %c0_i32, %c0_i32_0 : i32, i32
  }
  func.func @transform_2(%arg0: i32) -> (i32, i32) {
    %c0_i32 = arith.constant 0 : i32
    %c0_i32_0 = arith.constant 0 : i32
    %c0_i32_1 = arith.constant 0 : i32
    return %c0_i32, %c0_i32_0 : i32, i32
  }
  func.func @transform_3(%arg0: i32) -> (i32, i32) {
    %c0_i32 = arith.constant 0 : i32
    %c0_i32_0 = arith.constant 0 : i32
    %c0_i32_1 = arith.constant 0 : i32
    return %c0_i32, %c0_i32_0 : i32, i32
  }
  func.func @transform_4(%arg0: i32) -> (i32, i32) {
    %c0_i32 = arith.constant 0 : i32
    %c0_i32_0 = arith.constant 0 : i32
    %c0_i32_1 = arith.constant 0 : i32
    return %c0_i32, %c0_i32_0 : i32, i32
  }
  func.func @transform_5(%arg0: i32) -> (i32, i32) {
    %c0_i32 = arith.constant 0 : i32
    %c0_i32_0 = arith.constant 0 : i32
    %c0_i32_1 = arith.constant 0 : i32
    return %c0_i32, %c0_i32_0 : i32, i32
  }
}

</mosaic_0001>

<bundles_post_ra>
// kernel: tpu_custom_call.1
= control target key start
LH: loop header
LB: loop body
LE: loop exit
PB: predicated region body
PF: predicated region fallthrough
CT: control target
= control target key end

     0   :  { %10 = vsyncpa [#allocation4], 0  ;;  %s1313_s0 = inlined_call_operand.hbm [shape: bf16[16,32], index: 0, kind: input, shape index: {}]   ;;  %s1314_s1 = inlined_call_operand.hbm [shape: bf16[32,160], index: 1, kind: input, shape index: {}]   ;;  %s1315_s2 = inlined_call_operand.hbm [shape: bf16[32,32], index: 2, kind: input, shape index: {}]   ;;  %s1316_s3 = inlined_call_operand.hbm [shape: f32[16,32], index: 3, kind: input, shape index: {}]   ;;  %s1317_s4 = inlined_call_operand.hbm [shape: f32[16,32], index: 4, kind: input, shape index: {}]   ;;  %s1318_s5 = inlined_call_operand.hbm [shape: f32[16,96], index: 5, kind: output, shape index: {}]  }
   0x1   :  { %11 = vsyncpa [#allocation7], 0 }
   0x2   :  { %12 = vsyncpa [#allocation10], 0  ;;  %s31_s20 = sshll.u32 %s1314_s1, 4  ;;  %s32_s20 = int_to_ptr.hbm [resolvable:$true] %s31_s20 }
   0x3   :  { %13 = vsyncpa [#allocation5], 0  ;;  %s1057_s21 = smov [#allocation6]   ;;  %s57_s25 = sshll.u32 %s1316_s3, 4  ;;  %s58_s25 = int_to_ptr.hbm [resolvable:$true] %s57_s25 }
   0x4   :  { %s33_s22 = sshll.u32 %s1057_s21, 4  ;;  %s1058_s26 = smov 128   ;;  %s34_s22 = int_to_ptr.vmem [resolvable:$true] %s33_s22 }
   0x5   :  { %s1059_s27 = smov 8   ;;  %s1060_s28 = smov [#allocation9]  }
   0x6   :  { %39 = dma.hbm_to_vmem [thread:$0]  %s32_s20, 512, %s34_s22, [#allocation7], %s1058_s26, %s1058_s26, %s1059_s27  }
   0x7   :  { %s59_s29 = sshll.u32 %s1060_s28, 4  ;;  %s18_s6 = sshll.u32 %s1313_s0, 4  ;;  %s60_s29 = int_to_ptr.vmem [resolvable:$true] %s59_s29  ;;  %s19_s6 = int_to_ptr.hbm [resolvable:$true] %s18_s6 }
   0x8   :  { %65 = dma.hbm_to_vmem [thread:$0]  %s58_s25, 256, %s60_s29, [#allocation10], %s1058_s26, %s1058_s26, %s1059_s27  }
   0x9   :  { %s1061_s3 = smov [#allocation3]   ;;  %s44_s10 = sshll.u32 %s1315_s2, 4  ;;  %s45_s10 = int_to_ptr.hbm [resolvable:$true] %s44_s10 }
   0xa   :  { %s20_s7 = sshll.u32 %s1061_s3, 4  ;;  %s1062_s11 = smov 64   ;;  %s21_s7 = int_to_ptr.vmem [resolvable:$true] %s20_s7 }
   0xb   :  { %s1063_s12 = smov 4   ;;  %s1064_s0 = smov [#allocation8]  }
   0xc   :  { %26 = dma.hbm_to_vmem [thread:$0]  %s19_s6, 128, %s21_s7, [#allocation4], %s1062_s11, %s1062_s11, %s1063_s12  }
   0xd   :  { %s46_s13 = sshll.u32 %s1064_s0, 4  ;;  %s70_s16 = sshll.u32 %s1317_s4, 4  ;;  %s47_s13 = int_to_ptr.vmem [resolvable:$true] %s46_s13  ;;  %s71_s16 = int_to_ptr.hbm [resolvable:$true] %s70_s16 }
   0xe   :  { %52 = dma.hbm_to_vmem [thread:$0]  %s45_s10, 256, %s47_s13, [#allocation7], %s1062_s11, %s1062_s11, %s1063_s12  }
   0xf   :  { %s1065_s17 = smov [#allocation11]  }
  0x10   :  { %s72_s18 = sshll.u32 %s1065_s17, 4  ;;  %s73_s18 = int_to_ptr.vmem [resolvable:$true] %s72_s18 }
  0x11   :  { %78 = dma.hbm_to_vmem [thread:$0]  %s71_s16, 256, %s73_s18, [#allocation10], %s1058_s26, %s1058_s26, %s1059_s27  }
  0x12   :  { %1049 = dma.done.wait [#allocation4], 128  }
  0x13   :  { %1050 = vsyncadd [#allocation4], 4294967168 }
  0x14   :  { %1051 = dma.done.wait [#allocation7], 768  }
  0x15   :  { %1052 = vsyncadd [#allocation7], 4294966528 }
  0x16   :  { %1053 = dma.done.wait [#allocation10], 512  }
  0x17   :  { %1054 = vsyncadd [#allocation10], 4294966784  ;;  %v846_v0 = vld [vmem:[#allocation6 + $0x14] sm:$0xf]  ;;  %v812_v1 = vld [vmem:[#allocation6 + $0x18] sm:$0xf0]  ;;  %v219_v62 = vlaneseq }
  0x18   :  { %v844_v2 = vld [vmem:[#allocation6 + $0x4] sm:$0xf]  ;;  %v815_v3 = vor.u32 %v846_v0, %v812_v1  ;;  %v804_v4 = vld [vmem:[#allocation6 + $0x8] sm:$0xf0]  ;;  %v810_v5 = vld [vmem:[#allocation6 + $0x10] sm:$0xf] }
  0x19   :  { %v847_v6 = vld [vmem:[#allocation6 + $0x14] sm:$0xf0]  ;;  %v802_v7 = vld [vmem:[#allocation6] sm:$0xf]  ;;  %v845_v8 = vld [vmem:[#allocation6 + $0x4] sm:$0xf0]  ;;  %v807_v9 = vor.u32 %v844_v2, %v804_v4 }
  0x1a   :  { %155 = vmatpush.bf16.msra.mxu1 %v815_v3  ;;  %v811_v10 = vor.u32 %v847_v6, %v810_v5  ;;  %v163_v11 = vld [vmem:[#allocation9] sm:$0xff]  ;;  %v165_v12 = vld [vmem:[#allocation11] sm:$0xff]  ;;  %s1066_s2 = smov 96   ;;  %s1067_s4 = smov 32   ;;  %v803_v13 = vor.u32 %v845_v8, %v802_v7  ;;  %v843_v14 = vld [vmem:[#allocation3] sm:$0xff]  ;;  %vm131_vm0 = vcmask 261120  }
  0x1b   :  { %171 = vrot.lane.b32.xlu1 %v163_v11, %s1066_s2  ;;  %193 = vrot.lane.b32.xlu0 %v165_v12, %s1067_s4  ;;  %v164_v20 = vld [vmem:[#allocation9 + $0x8] sm:$0xff]  ;;  %v166_v21 = vld [vmem:[#allocation11 + $0x8] sm:$0xff]  ;;  %s1068_s19 = smov 120   ;;  %s1069_s20 = smov 72   ;;  %vm270_vm1 = vcmask 1043456   ;;  %vm229_vm2 = vcmask 64512  }
  0x1c   :  { %141 = vmatpush.bf16.msra.mxu0 %v811_v10  ;;  %s1070_s21 = smov 112   ;;  %s1071_s22 = smov 80   ;;  %v220_v63 = vshrl.u32 %v219_v62, 7  ;;  %v222_v0 = vand.u32 127, %v219_v62  ;;  %vm352_vm4 = vcmask 130112   ;;  %vm415_vm5 = vcmask 195712  }
  0x1d   :  { %s1072_s23 = smov 104   ;;  %s1073_s24 = smov 88   ;;  %vm478_vm6 = vcmask 261312   ;;  %vm769_vm7 = vcmask 523520   ;;  %vm772_vm8 = vcmask 785920  }
  0x1e   :  { %156 = vmatpush.bf16.msra.mxu1 %v807_v9  ;;  %vm1188_vm3 = vcmp.le.s32.totalorder %v222_v0, %v220_v63  ;;  %s1074_s25 = smov 40   ;;  %s1075_s28 = smov 56  }
  0x1f   :  { %s1076_s29 = smov 48   ;;  %s1077_s30 = smov 16  }
  0x20   :  { %142 = vmatpush.bf16.msra.mxu0 %v803_v13  ;;  %s1078_s1 = smov 24   ;;  %s1079_s6 = smov [#allocation12]  }
  0x21   :  { %817 = vmatmul.msk.bf16.vlgmr.msra.gmra.mxu1 %vm131_vm0, %v843_v14  ;;  %s779_s3 = sshll.u32 %s1079_s6, 4  ;;  %s781_s9 = sshll.u32 %s1318_s5, 4  ;;  %s780_s3 = int_to_ptr.vmem [resolvable:$true] %s779_s3  ;;  %s782_s9 = int_to_ptr.hbm [resolvable:$true] %s781_s9 }
  0x23   :  { %816 = vmatmul.msk.bf16.vlgmr.msra.gmra.mxu0 %vm131_vm0, %v843_v14 }
  0x8d   :  { %v172_v16 = vpop.permute.xlu1 %171  ;;  %v194_v27 = vpop.permute.xlu0 %193 }
  0x9e   :  { %v158_v15 = vpop.f32.mrf.mxu1 }
  0x9f   :  { %v201_v17 = vmul.f32 %v163_v11, %v158_v15 }
  0xa0   :  { %v1142_v18 = vpop.f32.mrf.mxu0 }
  0xa1   :  { %205 = vrot.lane.b32.xlu0 %v201_v17, %s1067_s4  ;;  %v177_v19 = vmul.f32 %v172_v16, %v1142_v18  ;;  %v217_v24 = vpack.c.bf16 %v1142_v18, %v1142_v18  ;;  %v167_v28 = vmul.f32 %v165_v12, %v1142_v18  ;;  %v199_v30 = vmul.f32 %v194_v27, %v1142_v18 }
  0xa3   :  { %181 = vrot.lane.b32.xlu2 %v177_v19, %s1067_s4  ;;  %v263_v25 = vunpack.c.l.b16 %v217_v24 }
  0xa5   :  { %v1152_v26 = vpack.c.b16 %v263_v25, %v263_v25 }
  0xa6   :  { %v160_v22 = vpop.f32.mrf.mxu1 }
  0xa7   :  { %v202_v23 = vmul.f32 %v164_v20, %v160_v22 }
  0xa8   :  { %v1164_v38 = vpop.f32.mrf.mxu0 }
  0xa9   :  { %173 = vrot.lane.b32.xlu0 %v164_v20, %s1066_s2  ;;  %v168_v55 = vmul.f32 %v166_v21, %v1164_v38 }
  0xb1   :  { %195 = vrot.lane.b32.xlu0 %v166_v21, %s1067_s4 }
  0xb9   :  { %207 = vrot.lane.b32.xlu0 %v202_v23, %s1067_s4 }
  0xc1   :  { %265 = vrot.lane.b32.xlu0 %v1152_v26, %s1062_s11 }
  0xfd   :  { %v182_v29 = vpop.permute.xlu2 %181 }
  0xfe   :  { %v187_v33 = vadd.f32 %v182_v29, %v167_v28 }
 0x100   :  { %v189_v36 = vmul.f32 0.35355338, %v187_v33 }
 0x102   :  { %v213_v40 = vpack.c.bf16 %v189_v36, %v189_v36 }
 0x104   :  { %v289_v42 = vunpack.c.l.b16 %v213_v40 }
 0x106   :  { %v290_v44 = vpack.c.b16 %v289_v42, %v289_v42 }
 0x113   :  { %v206_v31 = vpop.permute.xlu0 %205 }
 0x114   :  { %v1158_v32 = vadd.f32 %v206_v31, %v199_v30 }
 0x116   :  { %v215_v34 = vpack.c.bf16 %v1158_v32, %v1158_v32 }
 0x118   :  { %v225_v35 = vunpack.c.l.b16 %v215_v34 }
 0x11a   :  { %v1162_v37 = vpack.c.b16 %v225_v35, %v225_v35 }
 0x11b   :  { %v174_v39 = vpop.permute.xlu0 %173 }
 0x11c   :  { %v178_v41 = vmul.f32 %v174_v39, %v1164_v38  ;;  %227 = vrot.lane.b32.xlu1 %v1162_v37, %s1066_s2 }
 0x11e   :  { %183 = vrot.lane.b32.xlu0 %v178_v41, %s1067_s4 }
 0x123   :  { %v196_v43 = vpop.permute.xlu0 %195 }
 0x124   :  { %v200_v46 = vmul.f32 %v196_v43, %v1164_v38 }
 0x126   :  { %291 = vrot.lane.b32.xlu0 %v290_v44, %s1068_s19 }
 0x12b   :  { %v208_v45 = vpop.permute.xlu0 %207 }
 0x12c   :  { %v1174_v47 = vadd.f32 %v208_v45, %v200_v46 }
 0x12e   :  { %419 = vrot.lane.b32.xlu0 %v1162_v37, %s1069_s20  ;;  %v216_v48 = vpack.c.bf16 %v1174_v47, %v1174_v47 }
 0x130   :  { %v481_v49 = vunpack.c.l.b16 %v216_v48 }
 0x132   :  { %v482_v50 = vpack.c.b16 %v481_v49, %v481_v49 }
 0x133   :  { %v266_v51 = vpop.permute.xlu0 %265 }
 0x134   :  { %v272_v52 = vsel %vm270_vm1, %v266_v51, 0 }
 0x135   :  { %281 = vmatpush.bf16.msra.mxu3 %v272_v52 }
 0x136   :  { %354 = vrot.lane.b32.xlu0 %v290_v44, %s1070_s21 }
 0x13e   :  { %483 = vrot.lane.b32.xlu0 %v482_v50, %s1066_s2 }
 0x146   :  { %609 = vrot.lane.b32.xlu0 %v482_v50, %s1071_s22 }
 0x18e   :  { %v228_v53 = vpop.permute.xlu1 %227 }
 0x18f   :  { %v234_v54 = vsel %vm229_vm2, %v228_v53, 0 }
 0x190   :  { %243 = vmatpush.bf16.xpose.msra.mxu2 %v234_v54  ;;  %v184_v56 = vpop.permute.xlu0 %183 }
 0x191   :  { %v188_v57 = vadd.f32 %v184_v56, %v168_v55 }
 0x193   :  { %v190_v58 = vmul.f32 0.35355338, %v188_v57 }
 0x195   :  { %v1184_v59 = vpack.c.bf16 %v190_v58, %v190_v58 }
 0x197   :  { %v543_v60 = vunpack.c.l.b16 %v1184_v59  ;;  %818 = vmatmul.msk.bf16.vlgmr.msra.gmra.mxu2 %vm229_vm2, %v213_v40 }
 0x198   :  { %v292_v13 = vpop.permute.xlu0 %291 }
 0x199   :  { %v544_v61 = vpack.c.b16 %v543_v60, %v543_v60 }
 0x19b   :  { %669 = vrot.lane.b32.xlu0 %v544_v61, %s1072_s23 }
 0x1a0   :  { %v420_v14 = vpop.permute.xlu0 %419 }
 0x1a1   :  { %v425_v21 = vsel %vm229_vm2, %v420_v14, 0 }
 0x1a8   :  { %v355_v19 = vpop.permute.xlu0 %354 }
 0x1b0   :  { %v484_v23 = vpop.permute.xlu0 %483 }
 0x1b1   :  { %v489_v28 = vsel %vm229_vm2, %v484_v23, 0 }
 0x1b8   :  { %v610_v30 = vpop.permute.xlu0 %609 }
 0x1b9   :  { %v615_v31 = vsel %vm229_vm2, %v610_v30, 0 }
 0x21a   :  { %v245_v2 = vpop.f32.mrf.mxu2 }
 0x21b   :  { %v249_v3 = vsel %vm1188_vm3, %v245_v2, -inf }
 0x21c   :  { %v250_v4 = vsel %vm229_vm2, %v249_v3, -inf }
 0x21d   :  { %251 = vmax.xlane.f32.xlu2 %v250_v4 }
 0x222   :  { %v247_v5 = vpop.f32.mrf.mxu2 }
 0x223   :  { %v218_v5 = vpack.c.bf16 %v1164_v38, %v1164_v38 }
 0x235   :  { %293 = vrot.lane.b32.xlu2 %v1162_v37, %s1073_s24 }
 0x23d   :  { %417 = vrot.lane.b32.xlu2 %v290_v44, %s1072_s23 }
 0x245   :  { %547 = vrot.lane.b32.xlu2 %v482_v50, %s1073_s24 }
 0x24d   :  { %671 = vrot.lane.b32.xlu2 %v482_v50, %s1069_s20 }
 0x290   :  { %v252_v6 = vpop.xlane.xlu2 %251 }
 0x291   :  { %v253_v7 = vsub.f32 %v249_v3, %v252_v6  ;;  %v518_v6 = vunpack.c.l.b16 %v218_v5 }
 0x293   :  { %v254_v8 = vmul.f32 1.442695, %v253_v7  ;;  %v1246_v7 = vpack.c.b16 %v518_v6, %v518_v6 }
 0x295   :  { %873 = vpow2.f32 %v254_v8 }
 0x298   :  { %v294_v9 = vpop.permute.xlu2 %293 }
 0x299   :  { %v299_v10 = vsel %vm229_vm2, %v294_v9, 0 }
 0x29a   :  { %308 = vmatpush.bf16.xpose.msrb.mxu3 %v299_v10 }
 0x29b   :  { %v874_v11 = vpop.eup %873 }
 0x29c   :  { %v256_v12 = vsel %vm229_vm2, %v874_v11, 0.0 }
 0x29d   :  { %257 = vadd.xlane.f32.xlu1 %v256_v12 }
 0x2a0   :  { %v418_v22 = vpop.permute.xlu2 %417 }
 0x2a8   :  { %v548_v25 = vpop.permute.xlu2 %547 }
 0x2a9   :  { %v553_v29 = vsel %vm229_vm2, %v548_v25, 0 }
 0x2b0   :  { %v672_v33 = vpop.permute.xlu2 %671 }
 0x2b1   :  { %v677_v34 = vsel %vm229_vm2, %v672_v33, 0 }
 0x2b6   :  { %356 = vrot.lane.b32.xlu1 %v1162_v37, %s1071_s22  ;;  %v670_v37 = vpop.permute.xlu0 %669 }
 0x2be   :  { %545 = vrot.lane.b32.xlu1 %v544_v61, %s1068_s19 }
 0x2c6   :  { %607 = vrot.lane.b32.xlu1 %v544_v61, %s1070_s21 }
 0x310   :  { %v258_v15 = vpop.xlane.xlu1 %257 }
 0x311   :  { %875 = vrcp.f32 %v258_v15 }
 0x317   :  { %v876_v16 = vpop.eup %875 }
 0x318   :  { %v260_v17 = vmul.f32 %v876_v16, %v874_v11 }
 0x31a   :  { %v261_v20 = vpack.c.bf16 %v260_v17, %v260_v17 }
 0x31c   :  { %819 = vmatmul.msk.bf16.vlgmr.msra.gmra.mxu3 %vm229_vm2, %v261_v20 }
 0x31d   :  { %434 = vmatpush.bf16.xpose.msra.mxu3 %v425_v21 }
 0x328   :  { %v357_v24 = vpop.permute.xlu1 %356 }
 0x329   :  { %v362_v27 = vsel %vm229_vm2, %v357_v24, 0 }
 0x32a   :  { %371 = vmatpush.bf16.xpose.msrb.mxu1 %v362_v27 }
 0x32c   :  { %820 = vmatmul.msk.bf16.vlgmr.msrb.gmra.mxu3 %vm229_vm2, %v292_v13 }
 0x32d   :  { %562 = vmatpush.bf16.xpose.msrb.mxu3 %v553_v29 }
 0x330   :  { %v546_v35 = vpop.permute.xlu1 %545 }
 0x331   :  { %822 = vmatmul.msk.bf16.vlgmr.msrb.gmra.mxu1 %vm229_vm2, %v355_v19 }
 0x332   :  { %498 = vmatpush.bf16.xpose.msra.mxu1 %v489_v28 }
 0x338   :  { %v608_v36 = vpop.permute.xlu1 %607 }
 0x33a   :  { %624 = vmatpush.bf16.xpose.msrb.mxu1 %v615_v31 }
 0x33c   :  { %824 = vmatmul.msk.bf16.vlgmr.msra.gmra.mxu3 %vm229_vm2, %v418_v22 }
 0x33d   :  { %686 = vmatpush.bf16.xpose.msra.mxu3 %v677_v34 }
 0x341   :  { %826 = vmatmul.msk.bf16.vlgmr.msra.gmra.mxu1 %vm229_vm2, %v1184_v59 }
 0x34c   :  { %828 = vmatmul.msk.bf16.vlgmr.msrb.gmra.mxu3 %vm229_vm2, %v546_v35 }
 0x351   :  { %830 = vmatmul.msk.bf16.vlgmr.msrb.gmra.mxu1 %vm229_vm2, %v608_v36 }
 0x35c   :  { %832 = vmatmul.msk.bf16.vlgmr.msra.gmra.mxu3 %vm229_vm2, %v670_v37 }
 0x39f   :  { %v283_v39 = vpop.f32.mrf.mxu3 }
 0x3a0   :  { %287 = vst.msk [vmem:[#allocation2] sm:$0xff] %vm229_vm2, %v283_v39 }
 0x3a7   :  { %v285_v40 = vpop.f32.mrf.mxu3 }
 0x3ae   :  { %v373_v41 = vpop.f32.mrf.mxu1 }
 0x3af   :  { %v377_v42 = vsel %vm1188_vm3, %v373_v41, -inf  ;;  %v310_v43 = vpop.f32.mrf.mxu3 }
 0x3b0   :  { %v378_v44 = vsel %vm229_vm2, %v377_v42, -inf  ;;  %v314_v52 = vsel %vm1188_vm3, %v310_v43, -inf }
 0x3b1   :  { %379 = vmax.xlane.f32.xlu1 %v378_v44  ;;  %v315_v55 = vsel %vm229_vm2, %v314_v52, -inf }
 0x3b6   :  { %v375_v45 = vpop.f32.mrf.mxu1 }
 0x3b7   :  { %v312_v46 = vpop.f32.mrf.mxu3 }
 0x3be   :  { %v500_v48 = vpop.f32.mrf.mxu1 }
 0x3bf   :  { %v504_v49 = vsel %vm1188_vm3, %v500_v48, -inf  ;;  %v436_v50 = vpop.f32.mrf.mxu3 }
 0x3c0   :  { %v505_v51 = vsel %vm229_vm2, %v504_v49, -inf  ;;  %v440_v62 = vsel %vm1188_vm3, %v436_v50, -inf }
 0x3c1   :  { %506 = vmax.xlane.f32.xlu2 %v505_v51  ;;  %v441_v2 = vsel %vm229_vm2, %v440_v62, -inf }
 0x3c6   :  { %v502_v53 = vpop.f32.mrf.mxu1 }
 0x3c7   :  { %v438_v54 = vpop.f32.mrf.mxu3 }
 0x3c9   :  { %316 = vmax.xlane.f32.xlu2 %v315_v55 }
 0x3ce   :  { %v626_v56 = vpop.f32.mrf.mxu1 }
 0x3cf   :  { %v1230_v57 = vsel %vm1188_vm3, %v626_v56, -inf  ;;  %v564_v58 = vpop.f32.mrf.mxu3 }
 0x3d0   :  { %v568_v59 = vsel %vm1188_vm3, %v564_v58, -inf  ;;  %v631_v60 = vsel %vm229_vm2, %v1230_v57, -inf }
 0x3d1   :  { %632 = vmax.xlane.f32.xlu0 %v631_v60  ;;  %v569_v61 = vsel %vm229_vm2, %v568_v59, -inf }
 0x3d2   :  { %570 = vmax.xlane.f32.xlu1 %v569_v61 }
 0x3d6   :  { %v628_v63 = vpop.f32.mrf.mxu1 }
 0x3d7   :  { %v566_v0 = vpop.f32.mrf.mxu3 }
 0x3d9   :  { %442 = vmax.xlane.f32.xlu0 %v441_v2 }
 0x3df   :  { %v688_v3 = vpop.f32.mrf.mxu3 }
 0x3e0   :  { %v692_v14 = vsel %vm1188_vm3, %v688_v3, -inf }
 0x3e1   :  { %v693_v17 = vsel %vm229_vm2, %v692_v14, -inf }
 0x3e7   :  { %v690_v4 = vpop.f32.mrf.mxu3 }
 0x3eb   :  { %453 = vrot.lane.b32.xlu1 %v1152_v26, %s1074_s25 }
 0x3ed   :  { %327 = vrot.lane.b32.xlu0 %v1152_v26, %s1075_s28 }
 0x3f3   :  { %520 = vrot.lane.b32.xlu1 %v1246_v7, %s1062_s11 }
 0x424   :  { %v380_v8 = vpop.xlane.xlu1 %379 }
 0x425   :  { %v381_v9 = vsub.f32 %v377_v42, %v380_v8 }
 0x427   :  { %v382_v10 = vmul.f32 1.442695, %v381_v9 }
 0x429   :  { %877 = vpow2.f32 %v382_v10 }
 0x42f   :  { %v878_v11 = vpop.eup %877 }
 0x430   :  { %v384_v12 = vsel %vm229_vm2, %v878_v11, 0.0 }
 0x431   :  { %385 = vadd.xlane.f32.xlu2 %v384_v12 }
 0x434   :  { %v507_v13 = vpop.xlane.xlu2 %506 }
 0x435   :  { %v508_v15 = vsub.f32 %v504_v49, %v507_v13 }
 0x437   :  { %v509_v16 = vmul.f32 1.442695, %v508_v15 }
 0x439   :  { %879 = vpow2.f32 %v509_v16  ;;  %694 = vmax.xlane.f32.xlu2 %v693_v17 }
 0x43c   :  { %v317_v19 = vpop.xlane.xlu2 %316 }
 0x43d   :  { %v318_v20 = vsub.f32 %v314_v52, %v317_v19 }
 0x43f   :  { %v1254_v21 = vpop.eup %879  ;;  %v319_v22 = vmul.f32 1.442695, %v318_v20 }
 0x440   :  { %v511_v23 = vsel %vm229_vm2, %v1254_v21, 0.0 }
 0x441   :  { %881 = vpow2.f32 %v319_v22  ;;  %512 = vadd.xlane.f32.xlu0 %v511_v23 }
 0x444   :  { %v633_v24 = vpop.xlane.xlu0 %632 }
 0x445   :  { %v571_v30 = vpop.xlane.xlu1 %570  ;;  %v634_v42 = vsub.f32 %v1230_v57, %v633_v24 }
 0x446   :  { %v572_v39 = vsub.f32 %v568_v59, %v571_v30 }
 0x447   :  { %v882_v25 = vpop.eup %881  ;;  %v635_v43 = vmul.f32 1.442695, %v634_v42 }
 0x448   :  { %v321_v1 = vsel %vm229_vm2, %v882_v25, 0.0  ;;  %v573_v40 = vmul.f32 1.442695, %v572_v39 }
 0x449   :  { %322 = vadd.xlane.f32.xlu1 %v321_v1 }
 0x44c   :  { %v443_v27 = vpop.xlane.xlu0 %442 }
 0x44d   :  { %v444_v28 = vsub.f32 %v440_v62, %v443_v27 }
 0x44f   :  { %v445_v29 = vmul.f32 1.442695, %v444_v28 }
 0x451   :  { %883 = vpow2.f32 %v445_v29  ;;  %390 = vrot.lane.b32.xlu2 %v1152_v26, %s1076_s29 }
 0x452   :  { %885 = vpow2.f32 %v573_v40 }
 0x453   :  { %887 = vpow2.f32 %v635_v43 }
 0x457   :  { %v884_v31 = vpop.eup %883 }
 0x458   :  { %v447_v33 = vsel %vm229_vm2, %v884_v31, 0.0  ;;  %v886_v26 = vpop.eup %885 }
 0x459   :  { %448 = vadd.xlane.f32.xlu1 %v447_v33  ;;  %v575_v41 = vsel %vm229_vm2, %v886_v26, 0.0  ;;  %v1270_v44 = vpop.eup %887 }
 0x45a   :  { %v637_v45 = vsel %vm229_vm2, %v1270_v44, 0.0 }
 0x45d   :  { %v454_v34 = vpop.permute.xlu1 %453 }
 0x45e   :  { %v459_v37 = vsel %vm270_vm1, %v454_v34, 0 }
 0x45f   :  { %v328_v35 = vpop.permute.xlu0 %327 }
 0x460   :  { %v333_v36 = vsel %vm270_vm1, %v328_v35, 0 }
 0x461   :  { %342 = vmatpush.bf16.msrb.mxu0 %v333_v36 }
 0x465   :  { %468 = vmatpush.bf16.msra.mxu0 %v459_v37  ;;  %v521_v52 = vpop.permute.xlu1 %520 }
 0x466   :  { %v526_v56 = vsel %vm270_vm1, %v521_v52, 0 }
 0x472   :  { %581 = vrot.lane.b32.xlu1 %v1246_v7, %s1075_s28 }
 0x47a   :  { %576 = vadd.xlane.f32.xlu2 %v575_v41 }
 0x492   :  { %705 = vrot.lane.b32.xlu2 %v1246_v7, %s1074_s25 }
 0x49c   :  { %638 = vadd.xlane.f32.xlu1 %v637_v45 }
 0x4a4   :  { %v386_v46 = vpop.xlane.xlu2 %385 }
 0x4a5   :  { %889 = vrcp.f32 %v386_v46 }
 0x4ab   :  { %v890_v51 = vpop.eup %889 }
 0x4ac   :  { %v695_v48 = vpop.xlane.xlu2 %694  ;;  %v388_v53 = vmul.f32 %v890_v51, %v878_v11 }
 0x4ad   :  { %v696_v49 = vsub.f32 %v692_v14, %v695_v48  ;;  %v849_v48 = vld [vmem:[#allocation8 + $0x8] sm:$0xff] }
 0x4ae   :  { %v389_v59 = vpack.c.bf16 %v388_v53, %v388_v53  ;;  %759 = vmatpush.bf16.msra.mxu1 %v849_v48 }
 0x4af   :  { %v697_v50 = vmul.f32 1.442695, %v696_v49  ;;  %v848_v49 = vld [vmem:[#allocation8] sm:$0xff] }
 0x4b1   :  { %891 = vpow2.f32 %v697_v50 }
 0x4b2   :  { %760 = vmatpush.bf16.msra.mxu1 %v848_v49 }
 0x4b4   :  { %v391_v54 = vpop.permute.xlu2 %390  ;;  %v513_v58 = vpop.xlane.xlu0 %512 }
 0x4b5   :  { %v396_v55 = vsel %vm270_vm1, %v391_v54, 0  ;;  %893 = vrcp.f32 %v513_v58 }
 0x4b6   :  { %405 = vmatpush.bf16.msrb.mxu2 %v396_v55 }
 0x4b7   :  { %v892_v57 = vpop.eup %891 }
 0x4b8   :  { %v699_v60 = vsel %vm229_vm2, %v892_v57, 0.0 }
 0x4b9   :  { %823 = vmatmul.msk.bf16.vlgmr.msrb.gmra.mxu2 %vm229_vm2, %v389_v59  ;;  %700 = vadd.xlane.f32.xlu0 %v699_v60 }
 0x4ba   :  { %535 = vmatpush.bf16.msra.mxu2 %v526_v56 }
 0x4bb   :  { %v894_v62 = vpop.eup %893 }
 0x4bc   :  { %v323_v61 = vpop.xlane.xlu1 %322  ;;  %v515_v0 = vmul.f32 %v894_v62, %v1254_v21 }
 0x4bd   :  { %895 = vrcp.f32 %v323_v61 }
 0x4be   :  { %v516_v4 = vpack.c.bf16 %v515_v0, %v515_v0 }
 0x4c3   :  { %v896_v63 = vpop.eup %895 }
 0x4c4   :  { %v325_v2 = vmul.f32 %v896_v63, %v882_v25 }
 0x4c6   :  { %v326_v3 = vpack.c.bf16 %v325_v2, %v325_v2 }
 0x4c8   :  { %821 = vmatmul.msk.bf16.vlgmr.msrb.gmra.mxu0 %vm229_vm2, %v326_v3 }
 0x4c9   :  { %827 = vmatmul.msk.bf16.vlgmr.msra.gmra.mxu2 %vm229_vm2, %v516_v4 }
 0x4cc   :  { %v449_v5 = vpop.xlane.xlu1 %448 }
 0x4cd   :  { %897 = vrcp.f32 %v449_v5  ;;  %643 = vrot.lane.b32.xlu0 %v1246_v7, %s1076_s29 }
 0x4d3   :  { %v898_v6 = vpop.eup %897 }
 0x4d4   :  { %v451_v8 = vmul.f32 %v898_v6, %v884_v31 }
 0x4d6   :  { %v452_v9 = vpack.c.bf16 %v451_v8, %v451_v8 }
 0x4d8   :  { %825 = vmatmul.msk.bf16.vlgmr.msra.gmra.mxu0 %vm229_vm2, %v452_v9 }
 0x4e4   :  { %v582_v10 = vpop.permute.xlu1 %581 }
 0x4e5   :  { %v587_v11 = vsel %vm270_vm1, %v582_v10, 0 }
 0x4e6   :  { %596 = vmatpush.bf16.msrb.mxu0 %v587_v11 }
 0x4ed   :  { %v577_v12 = vpop.xlane.xlu2 %576 }
 0x4ee   :  { %899 = vrcp.f32 %v577_v12 }
 0x4f4   :  { %v900_v13 = vpop.eup %899 }
 0x4f5   :  { %v579_v14 = vmul.f32 %v900_v13, %v886_v26  ;;  %v706_v15 = vpop.permute.xlu2 %705 }
 0x4f6   :  { %v711_v16 = vsel %vm270_vm1, %v706_v15, 0 }
 0x4f7   :  { %v580_v17 = vpack.c.bf16 %v579_v14, %v579_v14  ;;  %720 = vmatpush.bf16.msra.mxu0 %v711_v16 }
 0x4f9   :  { %829 = vmatmul.msk.bf16.vlgmr.msrb.gmra.mxu0 %vm229_vm2, %v580_v17 }
 0x50f   :  { %v639_v19 = vpop.xlane.xlu1 %638 }
 0x52c   :  { %v701_v7 = vpop.xlane.xlu0 %700 }
 0x52d   :  { %901 = vrcp.f32 %v701_v7 }
 0x52e   :  { %903 = vrcp.f32 %v639_v19 }
 0x533   :  { %v902_v20 = vpop.eup %901 }
 0x534   :  { %v703_v21 = vmul.f32 %v902_v20, %v892_v57  ;;  %v904_v23 = vpop.eup %903 }
 0x535   :  { %v641_v25 = vmul.f32 %v904_v23, %v1270_v44 }
 0x536   :  { %v704_v22 = vpack.c.bf16 %v703_v21, %v703_v21 }
 0x537   :  { %v642_v28 = vpack.c.bf16 %v641_v25, %v641_v25 }
 0x538   :  { %833 = vmatmul.msk.bf16.vlgmr.msra.gmra.mxu0 %vm229_vm2, %v704_v22 }
 0x53c   :  { %v407_v24 = vpop.f32.mrf.mxu2 }
 0x53d   :  { %412 = vrot.lane.b32.xlu2 %v407_v24, %s1077_s30 }
 0x53f   :  { %v644_v1 = vpop.permute.xlu0 %643 }
 0x540   :  { %v649_v27 = vsel %vm270_vm1, %v644_v1, 0 }
 0x541   :  { %658 = vmatpush.bf16.msrb.mxu2 %v649_v27 }
 0x544   :  { %v409_v29 = vpop.f32.mrf.mxu2  ;;  %831 = vmatmul.msk.bf16.vlgmr.msrb.gmra.mxu2 %vm229_vm2, %v642_v28 }
 0x545   :  { %v344_v30 = vpop.f32.mrf.mxu0 }
 0x546   :  { %349 = vrot.lane.b32.xlu0 %v344_v30, %s1059_s27 }
 0x54c   :  { %v537_v31 = vpop.f32.mrf.mxu2 }
 0x54d   :  { %541 = vst.msk [vmem:[#allocation2 + $0x8] sm:$0xff] %vm229_vm2, %v537_v31  ;;  %v346_v33 = vpop.f32.mrf.mxu0 }
 0x554   :  { %v539_v34 = vpop.f32.mrf.mxu2 }
 0x555   :  { %v470_v35 = vpop.f32.mrf.mxu0 }
 0x556   :  { %475 = vrot.lane.b32.xlu2 %v470_v35, %s1078_s1 }
 0x55d   :  { %v472_v36 = vpop.f32.mrf.mxu0 }
 0x576   :  { %v598_v37 = vpop.f32.mrf.mxu0 }
 0x577   :  { %603 = vrot.lane.b32.xlu1 %v598_v37, %s1059_s27 }
 0x57e   :  { %v600_v39 = vpop.f32.mrf.mxu0 }
 0x597   :  { %v413_v40 = vpop.permute.xlu2 %412 }
 0x5b0   :  { %v476_v42 = vpop.permute.xlu2 %475 }
 0x5b5   :  { %v722_v26 = vpop.f32.mrf.mxu0 }
 0x5b8   :  { %v350_v41 = vpop.permute.xlu0 %349 }
 0x5b9   :  { %353 = vst.msk [vmem:[#allocation2] sm:$0xff] %vm352_vm4, %v350_v41 }
 0x5ba   :  { %416 = vst.msk [vmem:[#allocation2] sm:$0xff] %vm415_vm5, %v413_v40 }
 0x5bb   :  { %479 = vst.msk [vmem:[#allocation2] sm:$0xff] %vm478_vm6, %v476_v42 }
 0x5bd   :  { %v724_v43 = vpop.f32.mrf.mxu0 }
 0x5c2   :  { %v731_v52 = vld [vmem:[#allocation2] sm:$0xff] }
 0x5c7   :  { %v660_v44 = vpop.f32.mrf.mxu2 }
 0x5c8   :  { %665 = vrot.lane.b32.xlu0 %v660_v44, %s1077_s30 }
 0x5cf   :  { %v662_v45 = vpop.f32.mrf.mxu2 }
 0x5d0   :  { %727 = vrot.lane.b32.xlu0 %v722_v26, %s1078_s1 }
 0x5e9   :  { %v604_v46 = vpop.permute.xlu1 %603 }
 0x5ea   :  { %606 = vst.msk [vmem:[#allocation2 + $0x8] sm:$0xff] %vm352_vm4, %v604_v46 }
 0x63a   :  { %v666_v50 = vpop.permute.xlu0 %665 }
 0x63b   :  { %668 = vst.msk [vmem:[#allocation2 + $0x8] sm:$0xff] %vm415_vm5, %v666_v50 }
 0x642   :  { %v728_v51 = vpop.permute.xlu0 %727 }
 0x643   :  { %730 = vst.msk [vmem:[#allocation2 + $0x8] sm:$0xff] %vm478_vm6, %v728_v51 }
 0x64a   :  { %v732_v53 = vld [vmem:[#allocation2 + $0x8] sm:$0xff] }
 0x64b   :  { %v733_v54 = vpack.c.bf16 %v732_v53, %v731_v52 }
 0x64d   :  { %842 = vmatmul.msk.bf16.vlgmr.msra.gmra.mxu1 %vm131_vm0, %v733_v54 }
 0x6ca   :  { %v762_v55 = vpop.f32.mrf.mxu1 }
 0x6cb   :  { %767 = vst.msk [vmem:[#allocation12] sm:$0xff] %vm131_vm0, %v762_v55 }
 0x6cc   :  { %770 = vst.msk [vmem:[#allocation12] sm:$0xff] %vm769_vm7, %v1158_v32 }
 0x6cd   :  { %773 = vst.msk [vmem:[#allocation12] sm:$0xff] %vm772_vm8, %v1142_v18 }
 0x6d2   :  { %v764_v56 = vpop.f32.mrf.mxu1 }
 0x6d3   :  { %768 = vst.msk [vmem:[#allocation12 + $0x8] sm:$0xff] %vm131_vm0, %v764_v56 }
 0x6d4   :  { %771 = vst.msk [vmem:[#allocation12 + $0x8] sm:$0xff] %vm769_vm7, %v1174_v47 }
 0x6d5   :  { %774 = vst.msk [vmem:[#allocation12 + $0x8] sm:$0xff] %vm772_vm8, %v1164_v38 }
 0x6d6   :  { %787 = dma.vmem_to_hbm [thread:$0]  %s780_s3, 256, %s782_s9, [#allocation5], %s1058_s26, %s1058_s26, %s1059_s27  }
 0x6d7   :  { %1055 = dma.done.wait [#allocation5], 256  }
 0x6d8   :  { %1056 = vsyncadd [#allocation5], 4294967040 }
 0x6d9   :  { %792 = vsyncpa [#allocation4], 1 }
 0x6da   :  { %793 = vsyncpa [#allocation7], 1 }
 0x6db   :  { %794 = vsyncpa [#allocation10], 1 }
 0x6dc   :  { %795 = vsyncpa [#allocation5], 1 }

</bundles_post_ra>
